<compile_context>
chip_gen: v5e
topology: v5e:2x2
jax: 0.10.0
libtpu: 0.0.40
codegen_flags: <defaults>
</compile_context>

<pallas_src>
import math

import jax
import jax.numpy as jnp
from jax.experimental import pallas as pl
from jax.experimental.pallas import tpu as pltpu


def _round_up(n, m):
    return ((n + m - 1) // m) * m


def mlp_kernel(x_ref, w1_ref, b1_ref, w2_ref, b2_ref, w3_ref, b3_ref, o_ref):
    # x_ref: (TB, 6)
    # w1: (6, 32)  b1: (1, 32)   w2: (32, 16)  b2: (1, 16)   w3: (16, 3)  b3: (1, 3)
    # o_ref: (TB, 3)
    x = x_ref[...]
    h1 = jnp.dot(x, w1_ref[...], preferred_element_type=jnp.float32) + b1_ref[...]
    h1 = jnp.maximum(h1, 0.0)
    h2 = jnp.dot(h1, w2_ref[...], preferred_element_type=jnp.float32) + b2_ref[...]
    h2 = jnp.maximum(h2, 0.0)
    o_ref[...] = (
        jnp.dot(h2, w3_ref[...], preferred_element_type=jnp.float32) + b3_ref[...]
    )


def _choose_tile(B, tb):
    """128-align the requested tile; never exceed the tile that gives 2 grid steps
    (keeps both v7x TensorCores busy on large batches, collapses for tiny B)."""
    tb = _round_up(max(int(tb), 128), 128)
    tb_two_steps = _round_up(pl.cdiv(B, 2), 128)
    return max(128, min(tb, tb_two_steps))


def neural_net_forward(x, params, tb=8192):
    """x: (B, 6) float32 -> (B, 3) float32, matching PyTorch NeuralNet.forward.

    params: W1(32,6) b1(32,) W2(16,32) b2(16,) W3(3,16) b3(3,) (PyTorch-native)."""
    B = x.shape[0]
    tb = _choose_tile(B, tb)
    b_pad = _round_up(B, tb)
    grid = (b_pad // tb,)

    x = x.astype(jnp.float32)
    if b_pad != B:  # pad only when the tile doesn't divide B
        x = jnp.pad(x, ((0, b_pad - B), (0, 0)))

    # Tiny one-time reorientation of the parameters (negligible vs. x traffic).
    w1t, b1r = params["W1"].T, params["b1"].reshape(1, -1)
    w2t, b2r = params["W2"].T, params["b2"].reshape(1, -1)
    w3t, b3r = params["W3"].T, params["b3"].reshape(1, -1)

    resident = lambda a: pl.BlockSpec(a.shape, lambda i: (0, 0))

    param_bytes = 4 * (6 * 32 + 32 + 32 * 16 + 16 + 16 * 3 + 3)
    cost = pl.CostEstimate(
        flops=2 * (6 * 32 + 32 * 16 + 16 * 3) * b_pad,   # ~1504 * B
        transcendentals=0,
        bytes_accessed=(6 + 3) * 4 * b_pad + param_bytes,  # ~36 B / row
    )

    out = pl.pallas_call(
        mlp_kernel,
        out_shape=jax.ShapeDtypeStruct((b_pad, 3), jnp.float32),
        grid=grid,
        in_specs=[
            pl.BlockSpec((tb, 6), lambda i: (i, 0)),  # x streams over the batch
            resident(w1t), resident(b1r),
            resident(w2t), resident(b2r),
            resident(w3t), resident(b3r),
        ],
        out_specs=pl.BlockSpec((tb, 3), lambda i: (i, 0)),
        compiler_params=pltpu.CompilerParams(
            dimension_semantics=("parallel",),          # megacore sharding on v7x
            vmem_limit_bytes=48 * 1024 * 1024,          # lane-padded blocks need headroom
        ),
        cost_estimate=cost,
    )(x, w1t, b1r, w2t, b2r, w3t, b3r)

    return out if b_pad == B else out[:B]


def init_params(key):
    """PyTorch nn.Linear default init: U(-1/sqrt(fan_in), 1/sqrt(fan_in)).
    Weights stored PyTorch-native (out, in); biases as (out,)."""
    dims = [(6, 32), (32, 16), (16, 3)]
    params = {}
    for idx, (fan_in, fan_out) in enumerate(dims, start=1):
        key, kw, kb = jax.random.split(key, 3)
        bound = 1.0 / math.sqrt(fan_in)
        params[f"W{idx}"] = jax.random.uniform(
            kw, (fan_out, fan_in), jnp.float32, -bound, bound
        )
        params[f"b{idx}"] = jax.random.uniform(
            kb, (fan_out,), jnp.float32, -bound, bound
        )
    return params


def reference_forward(x, params):
    # Plain-JAX reference with PyTorch semantics: y = x @ W.T + b
    h1 = jnp.maximum(x @ params["W1"].T + params["b1"], 0.0)
    h2 = jnp.maximum(h1 @ params["W2"].T + params["b2"], 0.0)
    return h2 @ params["W3"].T + params["b3"]


if __name__ == "__main__":
    key = jax.random.PRNGKey(0)
    key, kx1, kx2 = jax.random.split(key, 3)
    params = init_params(key)

    # Small case consistent with the module (single grid step, padded batch).
    B1 = 8
    x1 = jax.random.normal(kx1, (B1, 6), jnp.float32)
    out1 = jax.block_until_ready(neural_net_forward(x1, params))
    ref1 = reference_forward(x1, params)
    assert out1.shape == (B1, 3)
    assert jnp.allclose(out1, ref1, atol=1e-5, rtol=1e-5)

    # Multi-tile case: tb collapses to 256 -> grid=(2,), exercises the batch grid,
    # resident weights, padding slice-off, and the 'parallel' batch axis.
    B2 = 384
    x2 = jax.random.normal(kx2, (B2, 6), jnp.float32)
    out2 = jax.block_until_ready(neural_net_forward(x2, params))
    ref2 = reference_forward(x2, params)
    assert out2.shape == (B2, 3)
    assert jnp.allclose(out2, ref2, atol=1e-5, rtol=1e-5)

    print("KERNEL_OK")
</pallas_src>

<mosaic_0001>
module attributes {stable_mosaic.version = 11 : i64} {
  func.func @mlp_kernel(%arg0: i32, %arg1: memref<128x6xf32, #tpu.memory_space<vmem>>, %arg2: memref<6x32xf32, #tpu.memory_space<vmem>>, %arg3: memref<1x32xf32, #tpu.memory_space<vmem>>, %arg4: memref<32x16xf32, #tpu.memory_space<vmem>>, %arg5: memref<1x16xf32, #tpu.memory_space<vmem>>, %arg6: memref<16x3xf32, #tpu.memory_space<vmem>>, %arg7: memref<1x3xf32, #tpu.memory_space<vmem>>, %arg8: memref<128x3xf32, #tpu.memory_space<vmem>>) attributes {dimension_semantics = [#tpu.dimension_semantics<parallel>], iteration_bounds = array<i64: 1>, scalar_prefetch = 0 : i64, scratch_operands = 0 : i64, tpu.core_type = #tpu.core_type<tc>, window_params = [{transform_indices = @transform_0, window_bounds = array<i64: 128, 6>}, {pipeline_mode = #tpu.pipeline_mode<synchronous>, transform_indices = @transform_1, window_bounds = array<i64: 6, 32>}, {pipeline_mode = #tpu.pipeline_mode<synchronous>, transform_indices = @transform_2, window_bounds = array<i64: 1, 32>}, {pipeline_mode = #tpu.pipeline_mode<synchronous>, transform_indices = @transform_3, window_bounds = array<i64: 32, 16>}, {pipeline_mode = #tpu.pipeline_mode<synchronous>, transform_indices = @transform_4, window_bounds = array<i64: 1, 16>}, {pipeline_mode = #tpu.pipeline_mode<synchronous>, transform_indices = @transform_5, window_bounds = array<i64: 16, 3>}, {pipeline_mode = #tpu.pipeline_mode<synchronous>, transform_indices = @transform_6, window_bounds = array<i64: 1, 3>}, {transform_indices = @transform_7, window_bounds = array<i64: 128, 3>}]} {
    %c0 = arith.constant 0 : index
    %c0_0 = arith.constant 0 : index
    %0 = vector.load %arg1[%c0, %c0_0] : memref<128x6xf32, #tpu.memory_space<vmem>>, vector<128x6xf32>
    %c0_1 = arith.constant 0 : index
    %c0_2 = arith.constant 0 : index
    %1 = vector.load %arg2[%c0_1, %c0_2] : memref<6x32xf32, #tpu.memory_space<vmem>>, vector<6x32xf32>
    %cst = arith.constant dense<0.000000e+00> : vector<128x32xf32>
    %2 = tpu.matmul %0, %1, %cst {dimension_numbers = #tpu.dot_dimension_numbers<[1], [0], [0], [1], [0, 0, 1, 1], [], []>} : vector<128x6xf32>, vector<6x32xf32>, vector<128x32xf32> -> vector<128x32xf32>
    %c0_3 = arith.constant 0 : index
    %c0_4 = arith.constant 0 : index
    %3 = vector.load %arg3[%c0_3, %c0_4] : memref<1x32xf32, #tpu.memory_space<vmem>>, vector<1x32xf32>
    %4 = vector.broadcast %3 : vector<1x32xf32> to vector<128x32xf32>
    %5 = arith.addf %2, %4 : vector<128x32xf32>
    %cst_5 = arith.constant 0.000000e+00 : f32
    %6 = vector.broadcast %cst_5 : f32 to vector<128x32xf32>
    %7 = arith.maximumf %5, %6 : vector<128x32xf32>
    %c0_6 = arith.constant 0 : index
    %c0_7 = arith.constant 0 : index
    %8 = vector.load %arg4[%c0_6, %c0_7] : memref<32x16xf32, #tpu.memory_space<vmem>>, vector<32x16xf32>
    %cst_8 = arith.constant dense<0.000000e+00> : vector<128x16xf32>
    %9 = tpu.matmul %7, %8, %cst_8 {dimension_numbers = #tpu.dot_dimension_numbers<[1], [0], [0], [1], [0, 0, 1, 1], [], []>} : vector<128x32xf32>, vector<32x16xf32>, vector<128x16xf32> -> vector<128x16xf32>
    %c0_9 = arith.constant 0 : index
    %c0_10 = arith.constant 0 : index
    %10 = vector.load %arg5[%c0_9, %c0_10] : memref<1x16xf32, #tpu.memory_space<vmem>>, vector<1x16xf32>
    %11 = vector.broadcast %10 : vector<1x16xf32> to vector<128x16xf32>
    %12 = arith.addf %9, %11 : vector<128x16xf32>
    %cst_11 = arith.constant 0.000000e+00 : f32
    %13 = vector.broadcast %cst_11 : f32 to vector<128x16xf32>
    %14 = arith.maximumf %12, %13 : vector<128x16xf32>
    %c0_12 = arith.constant 0 : index
    %c0_13 = arith.constant 0 : index
    %15 = vector.load %arg6[%c0_12, %c0_13] : memref<16x3xf32, #tpu.memory_space<vmem>>, vector<16x3xf32>
    %cst_14 = arith.constant dense<0.000000e+00> : vector<128x3xf32>
    %16 = tpu.matmul %14, %15, %cst_14 {dimension_numbers = #tpu.dot_dimension_numbers<[1], [0], [0], [1], [0, 0, 1, 1], [], []>} : vector<128x16xf32>, vector<16x3xf32>, vector<128x3xf32> -> vector<128x3xf32>
    %c0_15 = arith.constant 0 : index
    %c0_16 = arith.constant 0 : index
    %17 = vector.load %arg7[%c0_15, %c0_16] : memref<1x3xf32, #tpu.memory_space<vmem>>, vector<1x3xf32>
    %18 = vector.broadcast %17 : vector<1x3xf32> to vector<128x3xf32>
    %19 = arith.addf %16, %18 : vector<128x3xf32>
    %c0_17 = arith.constant 0 : index
    %c0_18 = arith.constant 0 : index
    %20 = vector.load %arg8[%c0_17, %c0_18] : memref<128x3xf32, #tpu.memory_space<vmem>>, vector<128x3xf32>
    tpu.vector_store %arg8[%c0_17, %c0_18], %19 {strides = array<i32>} : memref<128x3xf32, #tpu.memory_space<vmem>>, vector<128x3xf32>,
    return
  }
  func.func @transform_0(%arg0: i32) -> (i32, i32) {
    %c0_i32 = arith.constant 0 : i32
    %c0_i32_0 = arith.constant 0 : i32
    return %arg0, %c0_i32 : i32, i32
  }
  func.func @transform_1(%arg0: i32) -> (i32, i32) {
    %c0_i32 = arith.constant 0 : i32
    %c0_i32_0 = arith.constant 0 : i32
    %c0_i32_1 = arith.constant 0 : i32
    return %c0_i32, %c0_i32_0 : i32, i32
  }
  func.func @transform_2(%arg0: i32) -> (i32, i32) {
    %c0_i32 = arith.constant 0 : i32
    %c0_i32_0 = arith.constant 0 : i32
    %c0_i32_1 = arith.constant 0 : i32
    return %c0_i32, %c0_i32_0 : i32, i32
  }
  func.func @transform_3(%arg0: i32) -> (i32, i32) {
    %c0_i32 = arith.constant 0 : i32
    %c0_i32_0 = arith.constant 0 : i32
    %c0_i32_1 = arith.constant 0 : i32
    return %c0_i32, %c0_i32_0 : i32, i32
  }
  func.func @transform_4(%arg0: i32) -> (i32, i32) {
    %c0_i32 = arith.constant 0 : i32
    %c0_i32_0 = arith.constant 0 : i32
    %c0_i32_1 = arith.constant 0 : i32
    return %c0_i32, %c0_i32_0 : i32, i32
  }
  func.func @transform_5(%arg0: i32) -> (i32, i32) {
    %c0_i32 = arith.constant 0 : i32
    %c0_i32_0 = arith.constant 0 : i32
    %c0_i32_1 = arith.constant 0 : i32
    return %c0_i32, %c0_i32_0 : i32, i32
  }
  func.func @transform_6(%arg0: i32) -> (i32, i32) {
    %c0_i32 = arith.constant 0 : i32
    %c0_i32_0 = arith.constant 0 : i32
    %c0_i32_1 = arith.constant 0 : i32
    return %c0_i32, %c0_i32_0 : i32, i32
  }
  func.func @transform_7(%arg0: i32) -> (i32, i32) {
    %c0_i32 = arith.constant 0 : i32
    %c0_i32_0 = arith.constant 0 : i32
    return %arg0, %c0_i32 : i32, i32
  }
}

</mosaic_0001>

<bundles_post_ra>
// kernel: tpu_custom_call.1
= control target key start
LH: loop header
LB: loop body
LE: loop exit
PB: predicated region body
PF: predicated region fallthrough
CT: control target
= control target key end

     0   :  { %vm96_vm0 = vcmask 1045504   ;;  %vm47_vm1 = vcmask 48128   ;;  %vm189_vm2 = vcmask 261120   ;;  %vm325_vm3 = vcmask 130048   ;;  %s785_s1 = inlined_call_operand.vmem [shape: f32[6,32], index: 1, kind: input, shape index: {}]   ;;  %s786_s0 = inlined_call_operand.vmem [shape: f32[128,6], index: 0, kind: input, shape index: {}]   ;;  %s787_s2 = inlined_call_operand.vmem [shape: f32[1,32], index: 2, kind: input, shape index: {}]   ;;  %s788_s3 = inlined_call_operand.vmem [shape: f32[32,16], index: 3, kind: input, shape index: {}]   ;;  %s789_s4 = inlined_call_operand.vmem [shape: f32[1,16], index: 4, kind: input, shape index: {}]   ;;  %s790_s5 = inlined_call_operand.vmem [shape: f32[16,3], index: 5, kind: input, shape index: {}]   ;;  %s791_s6 = inlined_call_operand.vmem [shape: f32[1,3], index: 6, kind: input, shape index: {}]   ;;  %s792_s7 = inlined_call_operand.vmem [shape: f32[128,3], index: 7, kind: output, shape index: {}]  }
   0x1   :  { %v42_v0 = vld [vmem:[%s785_s1] sm:$0x3f]  ;;  %v27_v2 = vld [vmem:[%s786_s0 + $0x8] sm:$0xff]  ;;  %v28_v3 = vld [vmem:[%s786_s0 + $0x10] sm:$0xff]  ;;  %vm439_vm4 = vcmask 23552  }
   0x2   :  { %v26_v1 = vld [vmem:[%s786_s0] sm:$0xff]  ;;  %460 = vmatpush.msk.msra.mxu0 %vm96_vm0, %v42_v0  ;;  %509 = vmatpush.msk.msra.mxu3 %vm96_vm0, %v42_v0  ;;  %v29_v4 = vld [vmem:[%s786_s0 + $0x18] sm:$0xff]  ;;  %v31_v6 = vld [vmem:[%s786_s0 + $0x28] sm:$0xff] }
   0x3   :  { %461 = vmatmul.msk.f32.vlgmr.msra.gmra.mxu0 %vm47_vm1, %v26_v1  ;;  %v30_v5 = vld [vmem:[%s786_s0 + $0x20] sm:$0xff]  ;;  %v32_v7 = vld [vmem:[%s786_s0 + $0x30] sm:$0xff]  ;;  %v33_v8 = vld [vmem:[%s786_s0 + $0x38] sm:$0xff] }
   0x4   :  { %v34_v9 = vld [vmem:[%s786_s0 + $0x40] sm:$0xff]  ;;  %v39_v10 = vld [vmem:[%s786_s0 + $0x68] sm:$0xff]  ;;  %v184_v11 = vld [vmem:[%s788_s3 + $0x18] sm:$0xff] }
   0x5   :  { %474 = vmatmul.msk.f32.vlgmr.msra.gmra.mxu3 %vm47_vm1, %v39_v10  ;;  %250 = vmatpush.msra.mxu1 %v184_v11  ;;  %v35_v12 = vld [vmem:[%s786_s0 + $0x48] sm:$0xff]  ;;  %v40_v13 = vld [vmem:[%s786_s0 + $0x70] sm:$0xff]  ;;  %v41_v15 = vld [vmem:[%s786_s0 + $0x78] sm:$0xff] }
   0x6   :  { %510 = vmatpush.msrb.mxu3 %v184_v11  ;;  %v36_v14 = vld [vmem:[%s786_s0 + $0x50] sm:$0xff]  ;;  %v37_v16 = vld [vmem:[%s786_s0 + $0x58] sm:$0xff]  ;;  %v38_v18 = vld [vmem:[%s786_s0 + $0x60] sm:$0xff] }
   0x7   :  { %v183_v17 = vld [vmem:[%s788_s3 + $0x10] sm:$0xff]  ;;  %v182_v19 = vld [vmem:[%s788_s3 + $0x8] sm:$0xff]  ;;  %v181_v20 = vld [vmem:[%s788_s3] sm:$0xff] }
   0x8   :  { %251 = vmatpush.msra.mxu1 %v183_v17  ;;  %511 = vmatpush.msrb.mxu3 %v183_v17  ;;  %v641_v21 = vld [vmem:[%s787_s2] ss:$0 sm:$0xff]  ;;  %v320_v62 = vld [vmem:[%s790_s5 + $0x8] sm:$0xff] }
   0x9   :  { %388 = vmatpush.msra.mxu2 %v320_v62  ;;  %v319_v0 = vld [vmem:[%s790_s5] sm:$0xff] }
   0xa   :  { %252 = vmatpush.msra.mxu1 %v182_v19  ;;  %512 = vmatpush.msrb.mxu3 %v182_v19 }
   0xb   :  { %462 = vmatmul.msk.f32.gmra.mxu0 %vm47_vm1, %v27_v2  ;;  %389 = vmatpush.msra.mxu2 %v319_v0 }
   0xc   :  { %253 = vmatpush.msra.mxu1 %v181_v20  ;;  %513 = vmatpush.msrb.mxu3 %v181_v20 }
   0xd   :  { %475 = vmatmul.msk.f32.gmra.mxu3 %vm47_vm1, %v40_v13 }
   0xe   :  { %514 = vmatpush.msra.mxu3 %v320_v62 }
  0x10   :  { %515 = vmatpush.msra.mxu3 %v319_v0 }
  0x13   :  { %463 = vmatmul.msk.f32.gmra.mxu0 %vm47_vm1, %v28_v3 }
  0x15   :  { %476 = vmatmul.msk.f32.gmra.mxu3 %vm47_vm1, %v41_v15 }
  0x1b   :  { %464 = vmatmul.msk.f32.gmra.mxu0 %vm47_vm1, %v29_v4 }
  0x23   :  { %465 = vmatmul.msk.f32.gmra.mxu0 %vm47_vm1, %v30_v5 }
  0x2b   :  { %466 = vmatmul.msk.f32.gmra.mxu0 %vm47_vm1, %v31_v6 }
  0x33   :  { %467 = vmatmul.msk.f32.gmra.mxu0 %vm47_vm1, %v32_v7 }
  0x3b   :  { %468 = vmatmul.msk.f32.gmra.mxu0 %vm47_vm1, %v33_v8  ;;  %v684_v8 = vld [vmem:[%s789_s4] ss:$0 sm:$0xff] }
  0x43   :  { %469 = vmatmul.msk.f32.gmra.mxu0 %vm47_vm1, %v34_v9 }
  0x4b   :  { %470 = vmatmul.msk.f32.gmra.mxu0 %vm47_vm1, %v35_v12 }
  0x53   :  { %471 = vmatmul.msk.f32.gmra.mxu0 %vm47_vm1, %v36_v14 }
  0x5b   :  { %472 = vmatmul.msk.f32.gmra.mxu0 %vm47_vm1, %v37_v16 }
  0x63   :  { %473 = vmatmul.msk.f32.gmra.mxu0 %vm47_vm1, %v38_v18 }
  0x80   :  { %v117_v22 = vpop.f32.mrf.mxu0 }
  0x81   :  { %v118_v23 = vadd.f32 %v641_v21, %v117_v22 }
  0x83   :  { %v165_v24 = vmax.f32 %v118_v23, 0.0 }
  0x85   :  { %477 = vmatmul.msk.f32.vlgmr.msra.gmra.mxu1 %vm189_vm2, %v165_v24 }
  0x88   :  { %v120_v25 = vpop.f32.mrf.mxu0  ;;  %v156_v58 = vpop.f32.mrf.mxu3 }
  0x89   :  { %v121_v26 = vadd.f32 %v641_v21, %v120_v25  ;;  %v157_v63 = vadd.f32 %v641_v21, %v156_v58 }
  0x8b   :  { %v166_v27 = vmax.f32 %v121_v26, 0.0  ;;  %v178_v2 = vmax.f32 %v157_v63, 0.0 }
  0x8d   :  { %478 = vmatmul.msk.f32.gmra.mxu1 %vm189_vm2, %v166_v27 }
  0x90   :  { %v123_v28 = vpop.f32.mrf.mxu0  ;;  %v159_v1 = vpop.f32.mrf.mxu3 }
  0x91   :  { %v124_v29 = vadd.f32 %v641_v21, %v123_v28  ;;  %v160_v3 = vadd.f32 %v641_v21, %v159_v1 }
  0x93   :  { %v167_v30 = vmax.f32 %v124_v29, 0.0  ;;  %v179_v4 = vmax.f32 %v160_v3, 0.0 }
  0x95   :  { %479 = vmatmul.msk.f32.gmra.mxu1 %vm189_vm2, %v167_v30 }
  0x98   :  { %v126_v31 = vpop.f32.mrf.mxu0  ;;  %v162_v5 = vpop.f32.mrf.mxu3 }
  0x99   :  { %v127_v32 = vadd.f32 %v641_v21, %v126_v31  ;;  %v163_v6 = vadd.f32 %v641_v21, %v162_v5 }
  0x9b   :  { %v168_v33 = vmax.f32 %v127_v32, 0.0  ;;  %v180_v7 = vmax.f32 %v163_v6, 0.0 }
  0x9d   :  { %480 = vmatmul.msk.f32.gmra.mxu1 %vm189_vm2, %v168_v33 }
  0xa0   :  { %v129_v34 = vpop.f32.mrf.mxu0 }
  0xa1   :  { %v130_v35 = vadd.f32 %v641_v21, %v129_v34 }
  0xa3   :  { %v169_v36 = vmax.f32 %v130_v35, 0.0 }
  0xa5   :  { %481 = vmatmul.msk.f32.gmra.mxu1 %vm189_vm2, %v169_v36 }
  0xa8   :  { %v132_v37 = vpop.f32.mrf.mxu0 }
  0xa9   :  { %v133_v38 = vadd.f32 %v641_v21, %v132_v37 }
  0xab   :  { %v170_v39 = vmax.f32 %v133_v38, 0.0 }
  0xad   :  { %482 = vmatmul.msk.f32.gmra.mxu1 %vm189_vm2, %v170_v39 }
  0xb0   :  { %v135_v40 = vpop.f32.mrf.mxu0 }
  0xb1   :  { %v136_v41 = vadd.f32 %v641_v21, %v135_v40 }
  0xb3   :  { %v171_v42 = vmax.f32 %v136_v41, 0.0 }
  0xb5   :  { %483 = vmatmul.msk.f32.gmra.mxu1 %vm189_vm2, %v171_v42 }
  0xb8   :  { %v138_v43 = vpop.f32.mrf.mxu0 }
  0xb9   :  { %v139_v44 = vadd.f32 %v641_v21, %v138_v43 }
  0xbb   :  { %v172_v45 = vmax.f32 %v139_v44, 0.0 }
  0xbd   :  { %484 = vmatmul.msk.f32.gmra.mxu1 %vm189_vm2, %v172_v45 }
  0xc0   :  { %v141_v46 = vpop.f32.mrf.mxu0 }
  0xc1   :  { %v142_v47 = vadd.f32 %v641_v21, %v141_v46 }
  0xc3   :  { %v173_v48 = vmax.f32 %v142_v47, 0.0 }
  0xc5   :  { %485 = vmatmul.msk.f32.gmra.mxu1 %vm189_vm2, %v173_v48 }
  0xc8   :  { %v144_v49 = vpop.f32.mrf.mxu0 }
  0xc9   :  { %v145_v50 = vadd.f32 %v641_v21, %v144_v49 }
  0xcb   :  { %v174_v51 = vmax.f32 %v145_v50, 0.0 }
  0xcd   :  { %486 = vmatmul.msk.f32.gmra.mxu1 %vm189_vm2, %v174_v51 }
  0xd0   :  { %v147_v52 = vpop.f32.mrf.mxu0 }
  0xd1   :  { %v148_v53 = vadd.f32 %v641_v21, %v147_v52 }
  0xd3   :  { %v175_v54 = vmax.f32 %v148_v53, 0.0 }
  0xd5   :  { %487 = vmatmul.msk.f32.gmra.mxu1 %vm189_vm2, %v175_v54 }
  0xd8   :  { %v150_v55 = vpop.f32.mrf.mxu0 }
  0xd9   :  { %v151_v56 = vadd.f32 %v641_v21, %v150_v55 }
  0xdb   :  { %v176_v57 = vmax.f32 %v151_v56, 0.0 }
  0xdd   :  { %488 = vmatmul.msk.f32.gmra.mxu1 %vm189_vm2, %v176_v57  ;;  %v518_v57 = vld [vmem:[%s791_s6] ss:$0 sm:$0xff] }
  0xe0   :  { %v153_v59 = vpop.f32.mrf.mxu0 }
  0xe1   :  { %v154_v60 = vadd.f32 %v641_v21, %v153_v59 }
  0xe3   :  { %v177_v61 = vmax.f32 %v154_v60, 0.0 }
  0xe5   :  { %489 = vmatmul.msk.f32.vlgmr.msrb.gmra.mxu3 %vm189_vm2, %v177_v61 }
  0xed   :  { %490 = vmatmul.msk.f32.gmra.mxu3 %vm189_vm2, %v178_v2 }
  0xf5   :  { %491 = vmatmul.msk.f32.gmra.mxu3 %vm189_vm2, %v179_v4 }
  0xfd   :  { %492 = vmatmul.msk.f32.gmra.mxu3 %vm189_vm2, %v180_v7 }
 0x102   :  { %v255_v9 = vpop.f32.mrf.mxu1 }
 0x103   :  { %v256_v10 = vadd.f32 %v684_v8, %v255_v9 }
 0x105   :  { %v303_v11 = vmax.f32 %v256_v10, 0.0 }
 0x107   :  { %493 = vmatmul.msk.f32.vlgmr.msra.gmra.mxu2 %vm325_vm3, %v303_v11 }
 0x10a   :  { %v258_v12 = vpop.f32.mrf.mxu1 }
 0x10b   :  { %v259_v13 = vadd.f32 %v684_v8, %v258_v12 }
 0x10d   :  { %v304_v14 = vmax.f32 %v259_v13, 0.0 }
 0x10f   :  { %494 = vmatmul.msk.f32.gmra.mxu2 %vm325_vm3, %v304_v14 }
 0x112   :  { %v261_v15 = vpop.f32.mrf.mxu1 }
 0x113   :  { %v262_v16 = vadd.f32 %v684_v8, %v261_v15 }
 0x115   :  { %v305_v17 = vmax.f32 %v262_v16, 0.0 }
 0x117   :  { %495 = vmatmul.msk.f32.gmra.mxu2 %vm325_vm3, %v305_v17 }
 0x11a   :  { %v264_v18 = vpop.f32.mrf.mxu1 }
 0x11b   :  { %v265_v19 = vadd.f32 %v684_v8, %v264_v18 }
 0x11d   :  { %v306_v20 = vmax.f32 %v265_v19, 0.0 }
 0x11f   :  { %496 = vmatmul.msk.f32.gmra.mxu2 %vm325_vm3, %v306_v20 }
 0x122   :  { %v267_v21 = vpop.f32.mrf.mxu1 }
 0x123   :  { %v268_v22 = vadd.f32 %v684_v8, %v267_v21 }
 0x125   :  { %v307_v23 = vmax.f32 %v268_v22, 0.0 }
 0x127   :  { %497 = vmatmul.msk.f32.gmra.mxu2 %vm325_vm3, %v307_v23 }
 0x12a   :  { %v270_v24 = vpop.f32.mrf.mxu1 }
 0x12b   :  { %v271_v25 = vadd.f32 %v684_v8, %v270_v24 }
 0x12d   :  { %v308_v26 = vmax.f32 %v271_v25, 0.0 }
 0x12f   :  { %498 = vmatmul.msk.f32.gmra.mxu2 %vm325_vm3, %v308_v26 }
 0x132   :  { %v273_v27 = vpop.f32.mrf.mxu1 }
 0x133   :  { %v274_v28 = vadd.f32 %v684_v8, %v273_v27 }
 0x135   :  { %v309_v29 = vmax.f32 %v274_v28, 0.0 }
 0x137   :  { %499 = vmatmul.msk.f32.gmra.mxu2 %vm325_vm3, %v309_v29 }
 0x13a   :  { %v276_v30 = vpop.f32.mrf.mxu1 }
 0x13b   :  { %v277_v31 = vadd.f32 %v684_v8, %v276_v30 }
 0x13d   :  { %v310_v32 = vmax.f32 %v277_v31, 0.0 }
 0x13f   :  { %500 = vmatmul.msk.f32.gmra.mxu2 %vm325_vm3, %v310_v32 }
 0x142   :  { %v279_v33 = vpop.f32.mrf.mxu1 }
 0x143   :  { %v280_v34 = vadd.f32 %v684_v8, %v279_v33 }
 0x145   :  { %v311_v35 = vmax.f32 %v280_v34, 0.0 }
 0x147   :  { %501 = vmatmul.msk.f32.gmra.mxu2 %vm325_vm3, %v311_v35 }
 0x14a   :  { %v282_v36 = vpop.f32.mrf.mxu1 }
 0x14b   :  { %v283_v37 = vadd.f32 %v684_v8, %v282_v36 }
 0x14d   :  { %v312_v38 = vmax.f32 %v283_v37, 0.0 }
 0x14f   :  { %502 = vmatmul.msk.f32.gmra.mxu2 %vm325_vm3, %v312_v38 }
 0x152   :  { %v285_v39 = vpop.f32.mrf.mxu1 }
 0x153   :  { %v286_v40 = vadd.f32 %v684_v8, %v285_v39 }
 0x155   :  { %v313_v41 = vmax.f32 %v286_v40, 0.0 }
 0x157   :  { %503 = vmatmul.msk.f32.gmra.mxu2 %vm325_vm3, %v313_v41 }
 0x15a   :  { %v288_v42 = vpop.f32.mrf.mxu1 }
 0x15b   :  { %v289_v43 = vadd.f32 %v684_v8, %v288_v42 }
 0x15d   :  { %v314_v44 = vmax.f32 %v289_v43, 0.0 }
 0x15f   :  { %504 = vmatmul.msk.f32.gmra.mxu2 %vm325_vm3, %v314_v44 }
 0x168   :  { %v291_v45 = vpop.f32.mrf.mxu3 }
 0x169   :  { %v292_v46 = vadd.f32 %v684_v8, %v291_v45 }
 0x16b   :  { %v315_v47 = vmax.f32 %v292_v46, 0.0 }
 0x16d   :  { %505 = vmatmul.msk.f32.vlgmr.msra.gmra.mxu3 %vm325_vm3, %v315_v47 }
 0x170   :  { %v294_v48 = vpop.f32.mrf.mxu3 }
 0x171   :  { %v295_v49 = vadd.f32 %v684_v8, %v294_v48 }
 0x173   :  { %v316_v50 = vmax.f32 %v295_v49, 0.0 }
 0x175   :  { %506 = vmatmul.msk.f32.gmra.mxu3 %vm325_vm3, %v316_v50 }
 0x178   :  { %v297_v51 = vpop.f32.mrf.mxu3 }
 0x179   :  { %v298_v52 = vadd.f32 %v684_v8, %v297_v51 }
 0x17b   :  { %v317_v53 = vmax.f32 %v298_v52, 0.0 }
 0x17d   :  { %507 = vmatmul.msk.f32.gmra.mxu3 %vm325_vm3, %v317_v53 }
 0x180   :  { %v300_v54 = vpop.f32.mrf.mxu3 }
 0x181   :  { %v301_v55 = vadd.f32 %v684_v8, %v300_v54 }
 0x183   :  { %v318_v56 = vmax.f32 %v301_v55, 0.0 }
 0x185   :  { %508 = vmatmul.msk.f32.gmra.mxu3 %vm325_vm3, %v318_v56 }
 0x18a   :  { %v391_v58 = vpop.f32.mrf.mxu2 }
 0x18b   :  { %v392_v59 = vadd.f32 %v518_v57, %v391_v58 }
 0x18d   :  { %440 = vst.msk [vmem:[%s792_s7] sm:$0xff] %vm439_vm4, %v392_v59 }
 0x192   :  { %v394_v60 = vpop.f32.mrf.mxu2 }
 0x193   :  { %v395_v61 = vadd.f32 %v518_v57, %v394_v60 }
 0x195   :  { %441 = vst.msk [vmem:[%s792_s7 + $0x8] sm:$0xff] %vm439_vm4, %v395_v61 }
 0x19a   :  { %v397_v62 = vpop.f32.mrf.mxu2 }
 0x19b   :  { %v398_v63 = vadd.f32 %v518_v57, %v397_v62 }
 0x19d   :  { %442 = vst.msk [vmem:[%s792_s7 + $0x10] sm:$0xff] %vm439_vm4, %v398_v63 }
 0x1a2   :  { %v400_v0 = vpop.f32.mrf.mxu2 }
 0x1a3   :  { %v401_v1 = vadd.f32 %v518_v57, %v400_v0 }
 0x1a5   :  { %443 = vst.msk [vmem:[%s792_s7 + $0x18] sm:$0xff] %vm439_vm4, %v401_v1 }
 0x1aa   :  { %v403_v2 = vpop.f32.mrf.mxu2 }
 0x1ab   :  { %v404_v3 = vadd.f32 %v518_v57, %v403_v2 }
 0x1ad   :  { %444 = vst.msk [vmem:[%s792_s7 + $0x20] sm:$0xff] %vm439_vm4, %v404_v3 }
 0x1b2   :  { %v406_v4 = vpop.f32.mrf.mxu2 }
 0x1b3   :  { %v407_v5 = vadd.f32 %v518_v57, %v406_v4 }
 0x1b5   :  { %445 = vst.msk [vmem:[%s792_s7 + $0x28] sm:$0xff] %vm439_vm4, %v407_v5 }
 0x1ba   :  { %v409_v6 = vpop.f32.mrf.mxu2 }
 0x1bb   :  { %v410_v7 = vadd.f32 %v518_v57, %v409_v6 }
 0x1bd   :  { %446 = vst.msk [vmem:[%s792_s7 + $0x30] sm:$0xff] %vm439_vm4, %v410_v7 }
 0x1c2   :  { %v412_v8 = vpop.f32.mrf.mxu2 }
 0x1c3   :  { %v413_v9 = vadd.f32 %v518_v57, %v412_v8 }
 0x1c5   :  { %447 = vst.msk [vmem:[%s792_s7 + $0x38] sm:$0xff] %vm439_vm4, %v413_v9 }
 0x1ca   :  { %v415_v10 = vpop.f32.mrf.mxu2 }
 0x1cb   :  { %v416_v11 = vadd.f32 %v518_v57, %v415_v10 }
 0x1cd   :  { %448 = vst.msk [vmem:[%s792_s7 + $0x40] sm:$0xff] %vm439_vm4, %v416_v11 }
 0x1d2   :  { %v418_v12 = vpop.f32.mrf.mxu2 }
 0x1d3   :  { %v419_v13 = vadd.f32 %v518_v57, %v418_v12 }
 0x1d5   :  { %449 = vst.msk [vmem:[%s792_s7 + $0x48] sm:$0xff] %vm439_vm4, %v419_v13 }
 0x1da   :  { %v421_v14 = vpop.f32.mrf.mxu2 }
 0x1db   :  { %v422_v15 = vadd.f32 %v518_v57, %v421_v14 }
 0x1dd   :  { %450 = vst.msk [vmem:[%s792_s7 + $0x50] sm:$0xff] %vm439_vm4, %v422_v15 }
 0x1e2   :  { %v424_v16 = vpop.f32.mrf.mxu2 }
 0x1e3   :  { %v425_v17 = vadd.f32 %v518_v57, %v424_v16 }
 0x1e5   :  { %451 = vst.msk [vmem:[%s792_s7 + $0x58] sm:$0xff] %vm439_vm4, %v425_v17 }
 0x1f0   :  { %v427_v18 = vpop.f32.mrf.mxu3 }
 0x1f1   :  { %v428_v19 = vadd.f32 %v518_v57, %v427_v18 }
 0x1f3   :  { %452 = vst.msk [vmem:[%s792_s7 + $0x60] sm:$0xff] %vm439_vm4, %v428_v19 }
 0x1f8   :  { %v430_v20 = vpop.f32.mrf.mxu3 }
 0x1f9   :  { %v431_v21 = vadd.f32 %v518_v57, %v430_v20 }
 0x1fb   :  { %453 = vst.msk [vmem:[%s792_s7 + $0x68] sm:$0xff] %vm439_vm4, %v431_v21 }
 0x200   :  { %v433_v22 = vpop.f32.mrf.mxu3 }
 0x201   :  { %v434_v23 = vadd.f32 %v518_v57, %v433_v22 }
 0x203   :  { %454 = vst.msk [vmem:[%s792_s7 + $0x70] sm:$0xff] %vm439_vm4, %v434_v23 }
 0x208   :  { %v436_v24 = vpop.f32.mrf.mxu3 }
 0x209   :  { %v437_v25 = vadd.f32 %v518_v57, %v436_v24 }
 0x20b   :  { %455 = vst.msk [vmem:[%s792_s7 + $0x78] sm:$0xff] %vm439_vm4, %v437_v25 }

</bundles_post_ra>
